<compile_context>
chip_gen: v6e
topology: v6e:2x2x1
jax: 0.10.0
libtpu: 0.0.40
codegen_flags: <defaults>
</compile_context>

<pallas_src>
import jax
import jax.numpy as jnp
from jax.experimental import pallas as pl
from jax.experimental.pallas import tpu as pltpu

_MIB = 1024 * 1024


def _vmem_plan():
    """(input-block target bytes, vmem_limit_bytes) per TPU generation."""
    kind = ""
    try:
        kind = jax.devices()[0].device_kind.lower()
    except Exception:
        pass
    if "v7" in kind:
        # 64 MiB physical VMEM: keep 2x double-buffered input + f32 temps <= ~48 MiB.
        return 5 * _MIB, 44 * _MIB
    if "v6" in kind or "v5" in kind:
        # 128 MiB physical VMEM; HBM-bound, so bigger blocks amortize the
        # ~0.35us/step grid overhead.  (v5e scoped default is only 16 MiB, so
        # the limit must be raised explicitly.)
        return 12 * _MIB, 80 * _MIB
    # Unknown generation: conservative (v7x-safe) plan.
    return 6 * _MIB, 48 * _MIB


def _choose_blocks(B, T, D, itemsize, target_bytes):
    """Pick (bB, tT) so one (bB, tT, D) input block is ~target_bytes.

    Prefer keeping the whole time axis in one block (no halo needed).  For long
    sequences fall back to bB=1 and tile T in 8-row-aligned chunks; boundary
    diffs are patched in the JAX epilogue.
    """
    row_bytes = T * D * itemsize
    if row_bytes <= target_bytes:
        tT = T
        bB = max(1, target_bytes // row_bytes)
        if B >= 2:
            # Keep at least two grid steps: DMA/compute overlap + dual-TC v7x.
            bB = min(bB, -(-B // 2))
        bB = min(bB, B)
    else:
        bB = 1
        tT = max(8, (target_bytes // (D * itemsize)) // 8 * 8)  # sublane-aligned
        tT = min(tT, T)
    return int(bB), int(tT)


def _make_kernel(B, T, D, bB, tT, b_blocks, t_blocks):
    need_b_mask = (b_blocks * bB) != B
    need_t_mask = (t_blocks * tT) != T
    tm2 = tT - 2

    def kernel(x_ref, out_ref):
        # Single load + single upcast (bf16 stays bf16 in HBM, cast in-vreg).
        xf = x_ref[...].astype(jnp.float32)                 # (bB, tT, D)
        # diff-of-diff: two subtracts, no re-reading shifted VMEM windows.
        d1 = xf[:, 1:, :] - xf[:, :-1, :]                   # (bB, tT-1, D)
        d2 = d1[:, 1:, :] - d1[:, :-1, :]                   # (bB, tT-2, D)
        ad = jnp.abs(d2)
        # Select-free Smooth-L1 (beta=1): min(|d|,1) * (|d| - 0.5*min(|d|,1))
        m = jnp.minimum(ad, 1.0)
        elt = m * (ad - 0.5 * m)

        if need_b_mask or need_t_mask:
            mask = None
            if need_b_mask:
                bi = jax.lax.broadcasted_iota(jnp.int32, (bB, tm2, D), 0)
                mask = (pl.program_id(0) * bB + bi) < B
            if need_t_mask:
                ti = jax.lax.broadcasted_iota(jnp.int32, (bB, tm2, D), 1)
                tmask = (pl.program_id(1) * tT + ti) < (T - 2)
                mask = tmask if mask is None else (mask & tmask)
            elt = jnp.where(mask, elt, 0.0)

        # Fused (batch, time) reduction -> lane-dense (1,1,1,D) partial sums.
        out_ref[...] = jnp.sum(elt, axis=(0, 1), keepdims=True).reshape(out_ref.shape)

    return kernel


def _boundary_lane_sums(x, tT, t_blocks, T, D):
    """Smooth-L1 lane sums of the 2 second-diffs straddling each T-block
    boundary (tiny, pure JAX; exact halo correction for the T-tiled path)."""
    if t_blocks <= 1:
        return jnp.zeros((D,), jnp.float32)
    B = x.shape[0]
    nbd = t_blocks - 1
    rows, valid = [], []
    for j in range(1, t_blocks):
        s = j * tT - 2                      # first x-row of the 4-row halo group
        rows.extend(min(s + r, T - 1) for r in range(4))
        valid.extend([s <= T - 3, s + 1 <= T - 3])
    g = x[:, jnp.asarray(rows, jnp.int32), :].astype(jnp.float32)
    g = g.reshape(B, nbd, 4, D)
    d2 = g[:, :, 2:4, :] - 2.0 * g[:, :, 1:3, :] + g[:, :, 0:2, :]   # (B, nbd, 2, D)
    ad = jnp.abs(d2)
    m = jnp.minimum(ad, 1.0)
    elt = m * (ad - 0.5 * m)
    vmask = jnp.asarray(valid, jnp.bool_).reshape(1, nbd, 2, 1)
    elt = jnp.where(vmask, elt, 0.0)
    return jnp.sum(elt, axis=(0, 1, 2))                              # (D,)


def smooth_loss(x, k=0.1, split=52, target_block_bytes=None):
    """Pallas implementation of SmoothLoss.forward.  x: (B, T, D) float array."""
    B, T, D = x.shape
    assert T >= 3 and D > split, "need at least 3 time steps and D > split"
    # TODO(synk): for peak throughput D should be a multiple of 128 (lane width);
    # we do not pad D here because a wrapper-side pad would add a full extra
    # HBM read+write of x, erasing the win for this mem-bound kernel.

    tgt, vmem_limit = _vmem_plan()
    if target_block_bytes is not None:
        tgt = target_block_bytes
    itemsize = jnp.dtype(x.dtype).itemsize
    bB, tT = _choose_blocks(B, T, D, itemsize, tgt)
    b_blocks = int(pl.cdiv(B, bB))
    t_blocks = int(pl.cdiv(T, tT))

    kernel = _make_kernel(B, T, D, bB, tT, b_blocks, t_blocks)

    partials = pl.pallas_call(
        kernel,
        out_shape=jax.ShapeDtypeStruct((b_blocks, t_blocks, 1, D), jnp.float32),
        grid=(b_blocks, t_blocks),
        in_specs=[pl.BlockSpec((bB, tT, D), lambda i, j: (i, j, 0))],
        out_specs=pl.BlockSpec((1, 1, 1, D), lambda i, j: (i, j, 0, 0)),
        compiler_params=pltpu.CompilerParams(
            dimension_semantics=("parallel", "parallel"),
            vmem_limit_bytes=vmem_limit,
        ),
    )(x)

    # Tiny JAX epilogue: halo correction (only when T was tiled), then the
    # 52-lane hi/lo split, the two means and k-scaling on (D,) lane sums.
    lane_sums = jnp.sum(partials.reshape(-1, D), axis=0)
    lane_sums = lane_sums + _boundary_lane_sums(x, tT, t_blocks, T, D)

    lo_sum = jnp.sum(lane_sums[:split])
    hi_sum = jnp.sum(lane_sums[split:])
    n_hi = B * (T - 2) * (D - split)
    n_lo = B * (T - 2) * split
    return hi_sum / jnp.float32(n_hi) + jnp.float32(k) * (lo_sum / jnp.float32(n_lo))


def _smooth_loss_ref(x, k=0.1, split=52):
    # Pure-JAX reference for sanity checking.
    xf = x.astype(jnp.float32)
    d2 = xf[:, 2:, :] - 2.0 * xf[:, 1:-1, :] + xf[:, :-2, :]
    ad = jnp.abs(d2)
    elt = jnp.where(ad < 1.0, 0.5 * ad * ad, ad - 0.5)
    return jnp.mean(elt[:, :, split:]) + k * jnp.mean(elt[:, :, :split])


if __name__ == "__main__":
    # 1) Main small case: single T block, two batch blocks (exact tiling).
    B, T, D = 2, 8, 64
    x = jax.random.normal(jax.random.PRNGKey(0), (B, T, D), dtype=jnp.float32) * 1.5
    loss = jax.block_until_ready(smooth_loss(x, k=0.1))
    ref = _smooth_loss_ref(x, k=0.1)
    assert jnp.allclose(loss, ref, rtol=1e-5, atol=1e-5), (loss, ref)

    # 2) Force the long-sequence path: T tiled in 8-row chunks, ragged last
    #    T block, halo correction in the epilogue.
    x2 = jax.random.normal(jax.random.PRNGKey(1), (3, 37, 64), dtype=jnp.float32) * 1.5
    loss2 = jax.block_until_ready(smooth_loss(x2, k=0.1, target_block_bytes=8 * 64 * 4))
    ref2 = _smooth_loss_ref(x2, k=0.1)
    assert jnp.allclose(loss2, ref2, rtol=1e-5, atol=1e-5), (loss2, ref2)

    # 3) Ragged batch tail (bB=2 over B=3, masked in-kernel) with bf16 kept in
    #    HBM and upcast once inside the kernel.
    x3 = jax.random.normal(jax.random.PRNGKey(2), (3, 8, 64), dtype=jnp.bfloat16)
    loss3 = jax.block_until_ready(smooth_loss(x3, k=0.1))
    ref3 = _smooth_loss_ref(x3, k=0.1)
    assert jnp.allclose(loss3, ref3, rtol=1e-4, atol=1e-4), (loss3, ref3)

    print("KERNEL_OK")
</pallas_src>

<mosaic_0001>
module attributes {stable_mosaic.version = 11 : i64} {
  func.func @kernel(%arg0: i32, %arg1: i32, %arg2: memref<1x8x64xf32, #tpu.memory_space<vmem>>, %arg3: memref<1x1x1x64xf32, #tpu.memory_space<vmem>>) attributes {dimension_semantics = [#tpu.dimension_semantics<parallel>, #tpu.dimension_semantics<parallel>], iteration_bounds = array<i64: 2, 1>, scalar_prefetch = 0 : i64, scratch_operands = 0 : i64, tpu.core_type = #tpu.core_type<tc>, window_params = [{transform_indices = @transform_0, window_bounds = array<i64: 1, 8, 64>}, {transform_indices = @transform_1, window_bounds = array<i64: 1, 1, 1, 64>}]} {
    %c0 = arith.constant 0 : index
    %c0_0 = arith.constant 0 : index
    %c0_1 = arith.constant 0 : index
    %0 = vector.load %arg2[%c0, %c0_0, %c0_1] : memref<1x8x64xf32, #tpu.memory_space<vmem>>, vector<1x8x64xf32>
    %1 = vector.extract_strided_slice %0 {offsets = [0, 1, 0], sizes = [1, 7, 64], strides = [1, 1, 1]} : vector<1x8x64xf32> to vector<1x7x64xf32>
    %2 = vector.extract_strided_slice %0 {offsets = [0, 0, 0], sizes = [1, 7, 64], strides = [1, 1, 1]} : vector<1x8x64xf32> to vector<1x7x64xf32>
    %3 = arith.subf %1, %2 : vector<1x7x64xf32>
    %4 = vector.extract_strided_slice %3 {offsets = [0, 1, 0], sizes = [1, 6, 64], strides = [1, 1, 1]} : vector<1x7x64xf32> to vector<1x6x64xf32>
    %5 = vector.extract_strided_slice %3 {offsets = [0, 0, 0], sizes = [1, 6, 64], strides = [1, 1, 1]} : vector<1x7x64xf32> to vector<1x6x64xf32>
    %6 = arith.subf %4, %5 : vector<1x6x64xf32>
    %7 = math.absf %6 : vector<1x6x64xf32>
    %cst = arith.constant 1.000000e+00 : f32
    %8 = vector.broadcast %cst : f32 to vector<1x6x64xf32>
    %9 = arith.minimumf %7, %8 : vector<1x6x64xf32>
    %cst_2 = arith.constant 5.000000e-01 : f32
    %10 = vector.broadcast %cst_2 : f32 to vector<1x6x64xf32>
    %11 = arith.mulf %10, %9 : vector<1x6x64xf32>
    %12 = arith.subf %7, %11 : vector<1x6x64xf32>
    %13 = arith.mulf %9, %12 : vector<1x6x64xf32>
    %cst_3 = arith.constant dense<0.000000e+00> : vector<64xf32>
    %14 = vector.multi_reduction <add>, %13, %cst_3 [0, 1] : vector<1x6x64xf32> to vector<64xf32>
    %15 = vector.shape_cast %14 : vector<64xf32> to vector<1x1x64xf32>
    %16 = vector.shape_cast %15 : vector<1x1x64xf32> to vector<1x1x1x64xf32>
    %c0_4 = arith.constant 0 : index
    %c0_5 = arith.constant 0 : index
    %c0_6 = arith.constant 0 : index
    %c0_7 = arith.constant 0 : index
    %17 = vector.load %arg3[%c0_4, %c0_5, %c0_6, %c0_7] : memref<1x1x1x64xf32, #tpu.memory_space<vmem>>, vector<1x1x1x64xf32>
    tpu.vector_store %arg3[%c0_4, %c0_5, %c0_6, %c0_7], %16 {strides = array<i32>} : memref<1x1x1x64xf32, #tpu.memory_space<vmem>>, vector<1x1x1x64xf32>,
    return
  }
  func.func @transform_0(%arg0: i32, %arg1: i32) -> (i32, i32, i32) {
    %c0_i32 = arith.constant 0 : i32
    %c0_i32_0 = arith.constant 0 : i32
    return %arg0, %arg1, %c0_i32 : i32, i32, i32
  }
  func.func @transform_1(%arg0: i32, %arg1: i32) -> (i32, i32, i32, i32) {
    %c0_i32 = arith.constant 0 : i32
    %c0_i32_0 = arith.constant 0 : i32
    %c0_i32_1 = arith.constant 0 : i32
    return %arg0, %arg1, %c0_i32, %c0_i32_0 : i32, i32, i32, i32
  }
}

</mosaic_0001>

<bundles_post_ra>
// kernel: tpu_custom_call.1
= control target key start
LH: loop header
LB: loop body
LE: loop exit
PB: predicated region body
PF: predicated region fallthrough
CT: control target
= control target key end

     0   :  { %6 = vsyncpa [#allocation3], 0  ;;  %s595_s0 = inlined_call_operand.hbm [shape: f32[2,8,64], index: 0, kind: input, shape index: {}]   ;;  %s596_s1 = inlined_call_operand.hbm [shape: f32[2,1,1,64], index: 1, kind: output, shape index: {}]  }
   0x1   :  { %8 = vsyncpa [#allocation3 + $0x1], 0 }
   0x2   :  { %9 = vsyncpa [#allocation4], 0 }
   0x3   :  { %11 = vsyncpa [#allocation4 + $0x1], 0  ;;  %s460_s6 = smov 0   ;;  %s462_s7 = smov 0  }
   0x4   :  { %s464_s8 = smov 0   ;;  %s466_s9 = smov 0  }
   0x5   :  { %s468_s10 = smov 0   ;;  %s470_s11 = smov 0  }
   0x6 LB: > { %s265_s12 = sadd.s32 4294967295, %s446_s11   ;;  %s266_s13 = sadd.s32 4294967294, %s446_s11   ;;  %s446_s11 = sphi %s470_s11, %s17_s11   ;;  %s442_s10 = sphi %s468_s10, %s608_s10   ;;  %s438_s9 = sphi %s466_s9, %s607_s9   ;;  %s434_s8 = sphi %s464_s8, %s606_s8   ;;  %s430_s7 = sphi %s462_s7, %s605_s7   ;;  %s426_s6 = sphi %s460_s6, %s604_s6  }
   0x7   : > { %s29_s14 = sadd.s32 1, %s442_s10  ;;  %s38_s15 = sadd.s32 1, %s434_s8 }
   0x8   : > { %p31_p0 = scmp.ge.s32.totalorder %s29_s14, 2  ;;  %p45_p1 = scmp.ne.s32.totalorder %s434_s8, %s430_s7 }
   0x9   : > { %p46_p2 = scmp.eq.s32.totalorder %s446_s11, 0  ;;  %p51_p3 = scmp.ne.s32.totalorder %s430_s7, %s426_s6 }
   0xa   : > { %s610_s14 = smov (%p31_p0, %s29_s14), 0  ;;  %p52_p5 = scmp.eq.s32.totalorder %s265_s12, 0 }
   0xb   : > { %p501_p4 = por %p46_p2, %p45_p1  ;;  %s33_s17 = ssub.s32 %s442_s10, %s610_s14 }
   0xc   : > { %p77_p6 = scmp.eq.s32.totalorder %s265_s12, 1  ;;  %p36_p7 = scmp.eq.s32.totalorder %s33_s17, 0 }
   0xd   : > { %p507_p8 = por %p52_p5, %p51_p3  ;;  %p83_p10 = scmp.eq.s32.totalorder %s266_s13, 1 }
   0xe   : > { %p511_p9 = por %p77_p6, %p45_p1  ;;  %p288_p13 = scmp.lt.s32.totalorder %s446_s11, 2 }
   0xf   : > { %s516_s20 = scalar_select %p36_p7, %s434_s8, %s38_s15  }
  0x10   : > { %p518_p11 = por %p83_p10, %p51_p3  ;;  %s103_s22 = sand.u32 1, %s434_s8  }
  0x11   : > { %s269_s23 = sshll.u32 %s103_s22, 3  ;;  %s270_s24 = sshll.u32 %s442_s10, 7 }
  0x12   : > { %s600_s21 = scalar_select %p518_p11, 1, 0 }
  0x13   : > { %s113_s27 = scalar_lea.hbm %s595_s0, %s270_s24  ;;  %s107_s28 = scalar_lea.vmem [#allocation2], %s269_s23 }
  0x14   : > { %s115_s29 = sshll.u32 %s107_s28, 4  ;;  %p531_p0 = pnand %p288_p13, %p501_p4  ;;  %s116_s29 = int_to_ptr.vmem [resolvable:$true] %s115_s29 }
  0x15   : > { %p271_p1 = scmp.ge.s32.totalorder %s446_s11, 1  ;;  %p120_p2 = scmp.lt.s32.totalorder %s446_s11, 3 }
  0x16   : > { %s104_s2 = scalar_lea.sflag [#allocation3], %s103_s22  ;;  %p340_p3 = pneg %p531_p0 }
  0x17   : > { %s351_s3 = scalar_lea.vmem %s116_s29, 128  ;;  %s448_s4 = smov [#allocation2]  }
  0x18   : > { %p352_p5 = scmp.ne.s32.totalorder %s116_s29, %s351_s3  ;;  %s356_s5 = sshll.u32 %s448_s4, 4  ;;  %s357_s5 = int_to_ptr.vmem [resolvable:$false] %s356_s5 }
  0x19   : > { %s358_s12 = scalar_lea.vmem %s357_s5, 256  ;;  %p359_p10 = scmp.lt.s32.totalorder %s116_s29, %s357_s5 }
  0x1a   : > { %p354_p6 = pnand %p352_p5, %p340_p3  ;;  %p360_p12 = scmp.lt.s32.totalorder %s358_s12, %s351_s3 }
  0x1c   : > { %p355_p7 = pneg %p354_p6  ;;  %p361_p4 = por %p360_p12, %p359_p10 }
  0x1e   : > { %p362_p13 = pnand %p361_p4, %p355_p7 }
  0x20   : > { %365 = shalt.err (!%p362_p13)
}
  0x21   : > { %283 = dma.hbm_to_vmem [thread:$0]  (!%p531_p0), %s113_s27, 128, %s116_s29, %s104_s2  }
  0x22   : > { %p121_p11 = pnand %p271_p1, %p120_p2 }
  0x23   : > { %s546_s13 = sand.u32 (!%p121_p11), 1, %s430_s7  }
  0x24   : > { %124 = sbr.rel (%p121_p11) target bundleno = 89 (0x59), region = 24  ;;  %s272_s15 = sshll.u32 (!%p121_p11), %s546_s13, 3 }
  0x25   : > { %s127_s16 = scalar_lea.sflag (!%p121_p11), [#allocation3], %s546_s13  ;;  %s130_s17 = scalar_lea.vmem (!%p121_p11), [#allocation2], %s272_s15 }
  0x29   : > { %417 = dma.done.wait (%p507_p8), %s127_s16, 128  }
  0x2a   : > { %419 = vsyncadd (%p507_p8), %s127_s16, 4294967168  ;;  %v148_v0 = vld [vmem:[%s130_s17] sm:$0xff]  ;;  %vm165_vm0 = vcmask 521216   ;;  %s147_s18 = scalar_lea.vmem [#allocation5], %s546_s13  ;;  %s273_s23 = sshll.u32 %s438_s9, 4  ;;  %vm173_vm1 = vcmask 516096  }
  0x2b   : > { %v150_v1 = vrot.slane %v148_v0, 7  ;;  %s189_s22 = sshll.u32 %s147_s18, 4  ;;  %s187_s26 = scalar_lea.hbm %s596_s1, %s273_s23  ;;  %s190_s22 = int_to_ptr.vmem [resolvable:$true] %s189_s22 }
  0x2c   : > { %s176_s27 = scalar_lea.sflag [#allocation4], %s546_s13  ;;  %s366_s28 = scalar_lea.vmem %s190_s22, 16 }
  0x2d   : > { %v152_v2 = vsub.f32 %v148_v0, %v150_v1  ;;  %p367_p8 = scmp.ne.s32.totalorder %s190_s22, %s366_s28  ;;  %s449_s29 = smov [#allocation5]  }
  0x2e   : > { %s370_s30 = sshll.u32 %s449_s29, 4  ;;  %s371_s30 = int_to_ptr.vmem [resolvable:$false] %s370_s30 }
  0x2f   : > { %v154_v3 = vrot.slane %v152_v2, 7  ;;  %p368_p11 = pnand %p367_p8, %p511_p9  ;;  %s372_s2 = scalar_lea.vmem %s371_s30, 32 }
  0x30   : > { %p373_p0 = scmp.lt.s32.totalorder %s190_s22, %s371_s30  ;;  %p374_p1 = scmp.lt.s32.totalorder %s372_s2, %s366_s28 }
  0x31   : > { %v156_v4 = vsub.f32 %v152_v2, %v154_v3  ;;  %p369_p12 = pneg %p368_p11 }
  0x32   : > { %p375_p2 = por %p374_p1, %p373_p0 }
  0x33   : > { %v157_v5 = vand.u32 2147483647, %v156_v4 }
  0x34   : > { %p376_p3 = pnand %p375_p2, %p369_p12 }
  0x35   : > { %v158_v6 = vmin.f32 %v157_v5, 1.0 }
  0x37   : > { %v159_v7 = vmul.f32 0.5, %v158_v6 }
  0x39   : > { %v160_v8 = vsub.f32 %v157_v5, %v159_v7 }
  0x3b   : > { %v161_v9 = vmul.f32 %v160_v8, %v158_v6 }
  0x3d   : > { %v163_v10 = vrot.slane %v161_v9, 2 }
  0x3f   : > { %v166_v11 = vsel %vm165_vm0, %v163_v10, 0.0 }
  0x40   : > { %v167_v12 = vrot.slane %v166_v11, 4 }
  0x42   : > { %v168_v13 = vadd.f32 %v167_v12, %v166_v11 }
  0x44   : > { %v169_v14 = vrot.slane %v168_v13, 2 }
  0x46   : > { %v170_v15 = vadd.f32 %v169_v14, %v168_v13 }
  0x48   : > { %v171_v16 = vrot.slane %v170_v15, 1 }
  0x4a   : > { %v172_v17 = vadd.f32 %v171_v16, %v170_v15 }
  0x4c   : > { %174 = vst.msk [vmem:[%s147_s18] sm:$0x1] %vm173_vm1, %v172_v17 }
  0x4d   : > { %379 = shalt.err (!%p376_p3)
}
  0x4e   : > { %s380_s9 = scalar_lea.hbm %s187_s26, 16  ;;  %s384_s5 = scalar_lea.hbm %s596_s1, 32 }
  0x4f   : > { %p381_p5 = scmp.ne.s32.totalorder %s187_s26, %s380_s9  ;;  %p385_p10 = scmp.lt.s32.totalorder %s187_s26, %s596_s1 }
  0x50   : > { %p386_p4 = scmp.lt.s32.totalorder %s384_s5, %s380_s9 }
  0x51   : > { %p382_p6 = pnand %p381_p5, %p511_p9 }
  0x52   : > { %p387_p13 = por %p386_p4, %p385_p10 }
  0x53   : > { %p383_p7 = pneg %p382_p6 }
  0x55   : > { %p388_p8 = pnand %p387_p13, %p383_p7 }
  0x57   : > { %391 = shalt.err (!%p388_p8)
}
  0x58   : > { %278 = dma.vmem_to_hbm [thread:$0]  (%p511_p9), %s190_s22, 16, %s187_s26, %s176_s27  }
  0x59 PF: > { %s201_s15 = sand.u32 1, %s426_s6   ;;  %p602_p11 = scmp.ne.s32.totalorder %s600_s21, 0 }
  0x5a   : > { %p603_p12 = scmp.ge.s32.totalorder %s446_s11, 2  ;;  %s202_s16 = scalar_lea.sflag [#allocation4], %s201_s15 }
  0x5c   : > { %p285_p0 = pnand %p603_p12, %p602_p11 }
  0x5e   : > { %p286_p1 = pneg %p285_p0 }
  0x60   : > { %421 = dma.done.wait (%p286_p1), %s202_s16, 16  }
  0x61   : > { %423 = vsyncadd (%p286_p1), %s202_s16, 4294967280  ;;  %s17_s11 = sadd.s32 1, %s446_s11   ;;  %s604_s6 = smov %s430_s7 }
  0x62   : > { %p14_p2 = scmp.ge.s32.totalorder %s17_s11, 4   ;;  %s605_s7 = smov %s434_s8 }
  0x63   : > { %s606_s8 = smov %s516_s20  ;;  %s607_s9 = smov %s442_s10 }
  0x64   : > { %s608_s10 = smov %s610_s14  ;;  %16 = sbr.rel (!%p14_p2) target bundleno = 6 (0x6), region = 69 }
  0x69   :  { %206 = vsyncpa [#allocation3], 1 }
  0x6a   :  { %208 = vsyncpa [#allocation3 + $0x1], 1 }
  0x6b   :  { %209 = vsyncpa [#allocation4], 1 }
  0x6c   :  { %211 = vsyncpa [#allocation4 + $0x1], 1 }

</bundles_post_ra>
